<compile_context>
chip_gen: v6e
topology: v6e:2x2x1
jax: 0.10.0
libtpu: 0.0.40
codegen_flags: <defaults>
</compile_context>

<pallas_src>
import jax
import jax.numpy as jnp
from jax.experimental import pallas as pl
from jax.experimental.pallas import tpu as pltpu


def ote_kernel(ph_ref, h_ref, it_ref, v_ref,
               w_ph_ref, w_h_ref, w_it_ref, w_vv_ref, b_f_ref,
               out_ref):
    # ph, h: (TB, d_h)   it: (TB, d_it)   v, out: (TB, d_v)
    # w_*:  (in_i, 2*d_v) block-structured fused weights
    # b_f:  (1, 2*d_v) = [b_v | b_p]
    d_v = out_ref.shape[-1]

    # One fused pre-activation slab (TB, 2*d_v): cols [:d_v] -> v'-branch,
    # cols [d_v:] -> p-branch.  Partial dots replace the input concatenation.
    pre = (
        jnp.dot(ph_ref[...], w_ph_ref[...], preferred_element_type=jnp.float32)
        + jnp.dot(h_ref[...], w_h_ref[...], preferred_element_type=jnp.float32)
        + jnp.dot(it_ref[...], w_it_ref[...], preferred_element_type=jnp.float32)
        + jnp.dot(v_ref[...], w_vv_ref[...], preferred_element_type=jnp.float32)
        + b_f_ref[...]
    )

    v_prime = jnp.tanh(pre[:, :d_v])
    p = jax.nn.sigmoid(pre[:, d_v:])
    v = v_ref[...]
    # FMA form of (1 - p) * v + p * v_prime
    out_ref[...] = v + p * (v_prime - v)


def ote_forward(previous_h, h, it, v, w_v, b_v, w_p, b_p, *, tile_b=1024):
    """Pallas wrapper.

    Weights are (in, out) (transposed vs PyTorch); biases are (d_v,).
      w_v: (2*d_h + d_it, d_v) acting on cat(previous_h, h, it)
      w_p: (d_v + d_it, d_v)   acting on cat(v, it)
    """
    B, d_h = previous_h.shape
    d_it = it.shape[1]
    d_v = v.shape[1]

    # --- weight-only glue (tiny, O(d^2), independent of batch size) ---------
    # Build block-structured fused slabs of shape (in_i, 2*d_v):
    #   cols 0:d_v      -> v'-branch (w_v rows for this input, zeros otherwise)
    #   cols d_v:2*d_v  -> p-branch  (w_p rows for this input, zeros otherwise)
    z_h = jnp.zeros((d_h, d_v), w_v.dtype)
    z_v = jnp.zeros((d_v, d_v), w_p.dtype)
    w_ph = jnp.concatenate([w_v[:d_h], z_h], axis=1)               # previous_h
    w_hh = jnp.concatenate([w_v[d_h:2 * d_h], z_h], axis=1)        # h
    w_it = jnp.concatenate([w_v[2 * d_h:], w_p[d_v:]], axis=1)     # it -> both
    w_vv = jnp.concatenate([z_v, w_p[:d_v]], axis=1)               # v  -> p
    b_f = jnp.concatenate([b_v, b_p]).reshape(1, 2 * d_v)

    # --- batch grid ----------------------------------------------------------
    tb = B if B <= tile_b else tile_b  # tile_b is a multiple of 8
    grid = (pl.cdiv(B, tb),)

    act = lambda feat: pl.BlockSpec((tb, feat), lambda i: (i, 0))
    rep = lambda arr: pl.BlockSpec(arr.shape, lambda i: (0, 0))   # grid-resident

    return pl.pallas_call(
        ote_kernel,
        out_shape=jax.ShapeDtypeStruct((B, d_v), jnp.float32),
        grid=grid,
        in_specs=[
            act(d_h),      # previous_h
            act(d_h),      # h
            act(d_it),     # it
            act(d_v),      # v
            rep(w_ph), rep(w_hh), rep(w_it), rep(w_vv), rep(b_f),
        ],
        out_specs=act(d_v),
        compiler_params=pltpu.CompilerParams(
            dimension_semantics=("parallel",)),
    )(previous_h, h, it, v, w_ph, w_hh, w_it, w_vv, b_f)


def ote_reference(previous_h, h, it, v, w_v, b_v, w_p, b_p):
    delta = jnp.concatenate([previous_h, h], axis=1)
    v_prime = jnp.tanh(jnp.concatenate([delta, it], axis=1) @ w_v + b_v)
    p = jax.nn.sigmoid(jnp.concatenate([v, it], axis=1) @ w_p + b_p)
    return (1.0 - p) * v + p * v_prime


if __name__ == "__main__":
    # Small shapes consistent with the module's forward signature.
    B, d_h, d_it, d_v = 8, 32, 16, 32

    key = jax.random.PRNGKey(0)
    keys = jax.random.split(key, 8)

    previous_h = jax.random.normal(keys[0], (B, d_h), dtype=jnp.float32)
    h = jax.random.normal(keys[1], (B, d_h), dtype=jnp.float32)
    it = jax.random.normal(keys[2], (B, d_it), dtype=jnp.float32)
    v = jax.random.normal(keys[3], (B, d_v), dtype=jnp.float32)

    # Deterministic parameter init (uniform, roughly matching nn.Linear scale).
    in_v = 2 * d_h + d_it
    in_p = d_it + d_v
    w_v = jax.random.uniform(keys[4], (in_v, d_v), minval=-1.0, maxval=1.0) / jnp.sqrt(in_v)
    b_v = jax.random.uniform(keys[5], (d_v,), minval=-1.0, maxval=1.0) / jnp.sqrt(in_v)
    w_p = jax.random.uniform(keys[6], (in_p, d_v), minval=-1.0, maxval=1.0) / jnp.sqrt(in_p)
    b_p = jax.random.uniform(keys[7], (d_v,), minval=-1.0, maxval=1.0) / jnp.sqrt(in_p)

    out = ote_forward(previous_h, h, it, v, w_v, b_v, w_p, b_p)
    out = jax.block_until_ready(out)

    ref = ote_reference(previous_h, h, it, v, w_v, b_v, w_p, b_p)
    assert out.shape == (B, d_v)
    assert jnp.allclose(out, ref, atol=1e-5, rtol=1e-5), "mismatch vs JAX reference"

    print("KERNEL_OK")
</pallas_src>

<mosaic_0001>
module attributes {stable_mosaic.version = 11 : i64} {
  func.func @ote_kernel(%arg0: i32, %arg1: memref<8x32xf32, #tpu.memory_space<vmem>>, %arg2: memref<8x32xf32, #tpu.memory_space<vmem>>, %arg3: memref<8x16xf32, #tpu.memory_space<vmem>>, %arg4: memref<8x32xf32, #tpu.memory_space<vmem>>, %arg5: memref<32x64xf32, #tpu.memory_space<vmem>>, %arg6: memref<32x64xf32, #tpu.memory_space<vmem>>, %arg7: memref<16x64xf32, #tpu.memory_space<vmem>>, %arg8: memref<32x64xf32, #tpu.memory_space<vmem>>, %arg9: memref<1x64xf32, #tpu.memory_space<vmem>>, %arg10: memref<8x32xf32, #tpu.memory_space<vmem>>) attributes {dimension_semantics = [#tpu.dimension_semantics<parallel>], iteration_bounds = array<i64: 1>, scalar_prefetch = 0 : i64, scratch_operands = 0 : i64, tpu.core_type = #tpu.core_type<tc>, window_params = [{transform_indices = @transform_0, window_bounds = array<i64: 8, 32>}, {transform_indices = @transform_1, window_bounds = array<i64: 8, 32>}, {transform_indices = @transform_2, window_bounds = array<i64: 8, 16>}, {transform_indices = @transform_3, window_bounds = array<i64: 8, 32>}, {pipeline_mode = #tpu.pipeline_mode<synchronous>, transform_indices = @transform_4, window_bounds = array<i64: 32, 64>}, {pipeline_mode = #tpu.pipeline_mode<synchronous>, transform_indices = @transform_5, window_bounds = array<i64: 32, 64>}, {pipeline_mode = #tpu.pipeline_mode<synchronous>, transform_indices = @transform_6, window_bounds = array<i64: 16, 64>}, {pipeline_mode = #tpu.pipeline_mode<synchronous>, transform_indices = @transform_7, window_bounds = array<i64: 32, 64>}, {pipeline_mode = #tpu.pipeline_mode<synchronous>, transform_indices = @transform_8, window_bounds = array<i64: 1, 64>}, {transform_indices = @transform_9, window_bounds = array<i64: 8, 32>}]} {
    %c0 = arith.constant 0 : index
    %c0_0 = arith.constant 0 : index
    %0 = vector.load %arg1[%c0, %c0_0] : memref<8x32xf32, #tpu.memory_space<vmem>>, vector<8x32xf32>
    %c0_1 = arith.constant 0 : index
    %c0_2 = arith.constant 0 : index
    %1 = vector.load %arg5[%c0_1, %c0_2] : memref<32x64xf32, #tpu.memory_space<vmem>>, vector<32x64xf32>
    %cst = arith.constant dense<0.000000e+00> : vector<8x64xf32>
    %2 = tpu.matmul %0, %1, %cst {dimension_numbers = #tpu.dot_dimension_numbers<[1], [0], [0], [1], [0, 0, 1, 1], [], []>} : vector<8x32xf32>, vector<32x64xf32>, vector<8x64xf32> -> vector<8x64xf32>
    %c0_3 = arith.constant 0 : index
    %c0_4 = arith.constant 0 : index
    %3 = vector.load %arg2[%c0_3, %c0_4] : memref<8x32xf32, #tpu.memory_space<vmem>>, vector<8x32xf32>
    %c0_5 = arith.constant 0 : index
    %c0_6 = arith.constant 0 : index
    %4 = vector.load %arg6[%c0_5, %c0_6] : memref<32x64xf32, #tpu.memory_space<vmem>>, vector<32x64xf32>
    %cst_7 = arith.constant dense<0.000000e+00> : vector<8x64xf32>
    %5 = tpu.matmul %3, %4, %cst_7 {dimension_numbers = #tpu.dot_dimension_numbers<[1], [0], [0], [1], [0, 0, 1, 1], [], []>} : vector<8x32xf32>, vector<32x64xf32>, vector<8x64xf32> -> vector<8x64xf32>
    %6 = arith.addf %2, %5 : vector<8x64xf32>
    %c0_8 = arith.constant 0 : index
    %c0_9 = arith.constant 0 : index
    %7 = vector.load %arg3[%c0_8, %c0_9] : memref<8x16xf32, #tpu.memory_space<vmem>>, vector<8x16xf32>
    %c0_10 = arith.constant 0 : index
    %c0_11 = arith.constant 0 : index
    %8 = vector.load %arg7[%c0_10, %c0_11] : memref<16x64xf32, #tpu.memory_space<vmem>>, vector<16x64xf32>
    %cst_12 = arith.constant dense<0.000000e+00> : vector<8x64xf32>
    %9 = tpu.matmul %7, %8, %cst_12 {dimension_numbers = #tpu.dot_dimension_numbers<[1], [0], [0], [1], [0, 0, 1, 1], [], []>} : vector<8x16xf32>, vector<16x64xf32>, vector<8x64xf32> -> vector<8x64xf32>
    %10 = arith.addf %6, %9 : vector<8x64xf32>
    %c0_13 = arith.constant 0 : index
    %c0_14 = arith.constant 0 : index
    %11 = vector.load %arg4[%c0_13, %c0_14] : memref<8x32xf32, #tpu.memory_space<vmem>>, vector<8x32xf32>
    %c0_15 = arith.constant 0 : index
    %c0_16 = arith.constant 0 : index
    %12 = vector.load %arg8[%c0_15, %c0_16] : memref<32x64xf32, #tpu.memory_space<vmem>>, vector<32x64xf32>
    %cst_17 = arith.constant dense<0.000000e+00> : vector<8x64xf32>
    %13 = tpu.matmul %11, %12, %cst_17 {dimension_numbers = #tpu.dot_dimension_numbers<[1], [0], [0], [1], [0, 0, 1, 1], [], []>} : vector<8x32xf32>, vector<32x64xf32>, vector<8x64xf32> -> vector<8x64xf32>
    %14 = arith.addf %10, %13 : vector<8x64xf32>
    %c0_18 = arith.constant 0 : index
    %c0_19 = arith.constant 0 : index
    %15 = vector.load %arg9[%c0_18, %c0_19] : memref<1x64xf32, #tpu.memory_space<vmem>>, vector<1x64xf32>
    %16 = vector.broadcast %15 : vector<1x64xf32> to vector<8x64xf32>
    %17 = arith.addf %14, %16 : vector<8x64xf32>
    %18 = vector.extract_strided_slice %17 {offsets = [0, 0], sizes = [8, 32], strides = [1, 1]} : vector<8x64xf32> to vector<8x32xf32>
    %19 = math.tanh %18 : vector<8x32xf32>
    %20 = vector.extract_strided_slice %17 {offsets = [0, 32], sizes = [8, 32], strides = [1, 1]} : vector<8x64xf32> to vector<8x32xf32>
    %21 = arith.negf %20 : vector<8x32xf32>
    %22 = math.exp %21 : vector<8x32xf32>
    %cst_20 = arith.constant 1.000000e+00 : f32
    %23 = vector.broadcast %cst_20 : f32 to vector<8x32xf32>
    %24 = arith.addf %23, %22 : vector<8x32xf32>
    %25 = arith.divf %23, %24 : vector<8x32xf32>
    %c0_21 = arith.constant 0 : index
    %c0_22 = arith.constant 0 : index
    %26 = vector.load %arg4[%c0_21, %c0_22] : memref<8x32xf32, #tpu.memory_space<vmem>>, vector<8x32xf32>
    %27 = arith.subf %19, %26 : vector<8x32xf32>
    %28 = arith.mulf %25, %27 : vector<8x32xf32>
    %29 = arith.addf %26, %28 : vector<8x32xf32>
    %c0_23 = arith.constant 0 : index
    %c0_24 = arith.constant 0 : index
    %30 = vector.load %arg10[%c0_23, %c0_24] : memref<8x32xf32, #tpu.memory_space<vmem>>, vector<8x32xf32>
    tpu.vector_store %arg10[%c0_23, %c0_24], %29 {strides = array<i32>} : memref<8x32xf32, #tpu.memory_space<vmem>>, vector<8x32xf32>,
    return
  }
  func.func @transform_0(%arg0: i32) -> (i32, i32) {
    %c0_i32 = arith.constant 0 : i32
    %c0_i32_0 = arith.constant 0 : i32
    return %arg0, %c0_i32 : i32, i32
  }
  func.func @transform_1(%arg0: i32) -> (i32, i32) {
    %c0_i32 = arith.constant 0 : i32
    %c0_i32_0 = arith.constant 0 : i32
    return %arg0, %c0_i32 : i32, i32
  }
  func.func @transform_2(%arg0: i32) -> (i32, i32) {
    %c0_i32 = arith.constant 0 : i32
    %c0_i32_0 = arith.constant 0 : i32
    return %arg0, %c0_i32 : i32, i32
  }
  func.func @transform_3(%arg0: i32) -> (i32, i32) {
    %c0_i32 = arith.constant 0 : i32
    %c0_i32_0 = arith.constant 0 : i32
    return %arg0, %c0_i32 : i32, i32
  }
  func.func @transform_4(%arg0: i32) -> (i32, i32) {
    %c0_i32 = arith.constant 0 : i32
    %c0_i32_0 = arith.constant 0 : i32
    %c0_i32_1 = arith.constant 0 : i32
    return %c0_i32, %c0_i32_0 : i32, i32
  }
  func.func @transform_5(%arg0: i32) -> (i32, i32) {
    %c0_i32 = arith.constant 0 : i32
    %c0_i32_0 = arith.constant 0 : i32
    %c0_i32_1 = arith.constant 0 : i32
    return %c0_i32, %c0_i32_0 : i32, i32
  }
  func.func @transform_6(%arg0: i32) -> (i32, i32) {
    %c0_i32 = arith.constant 0 : i32
    %c0_i32_0 = arith.constant 0 : i32
    %c0_i32_1 = arith.constant 0 : i32
    return %c0_i32, %c0_i32_0 : i32, i32
  }
  func.func @transform_7(%arg0: i32) -> (i32, i32) {
    %c0_i32 = arith.constant 0 : i32
    %c0_i32_0 = arith.constant 0 : i32
    %c0_i32_1 = arith.constant 0 : i32
    return %c0_i32, %c0_i32_0 : i32, i32
  }
  func.func @transform_8(%arg0: i32) -> (i32, i32) {
    %c0_i32 = arith.constant 0 : i32
    %c0_i32_0 = arith.constant 0 : i32
    %c0_i32_1 = arith.constant 0 : i32
    return %c0_i32, %c0_i32_0 : i32, i32
  }
  func.func @transform_9(%arg0: i32) -> (i32, i32) {
    %c0_i32 = arith.constant 0 : i32
    %c0_i32_0 = arith.constant 0 : i32
    return %arg0, %c0_i32 : i32, i32
  }
}

</mosaic_0001>

<bundles_post_ra>
// kernel: tpu_custom_call.1
= control target key start
LH: loop header
LB: loop body
LE: loop exit
PB: predicated region body
PF: predicated region fallthrough
CT: control target
= control target key end

     0   :  { %14 = vsyncpa [#allocation3], 0  ;;  %s886_s0 = inlined_call_operand.hbm [shape: f32[8,32], index: 0, kind: input, shape index: {}]   ;;  %s887_s1 = inlined_call_operand.hbm [shape: f32[8,32], index: 1, kind: input, shape index: {}]   ;;  %s888_s2 = inlined_call_operand.hbm [shape: f32[8,16], index: 2, kind: input, shape index: {}]   ;;  %s889_s3 = inlined_call_operand.hbm [shape: f32[8,32], index: 3, kind: input, shape index: {}]   ;;  %s890_s4 = inlined_call_operand.hbm [shape: f32[32,64], index: 4, kind: input, shape index: {}]   ;;  %s891_s5 = inlined_call_operand.hbm [shape: f32[32,64], index: 5, kind: input, shape index: {}]   ;;  %s892_s6 = inlined_call_operand.hbm [shape: f32[16,64], index: 6, kind: input, shape index: {}]   ;;  %s893_s7 = inlined_call_operand.hbm [shape: f32[32,64], index: 7, kind: input, shape index: {}]   ;;  %s894_s8 = inlined_call_operand.vmem [shape: f32[1,64], index: 8, kind: input, shape index: {}]   ;;  %s895_s9 = inlined_call_operand.hbm [shape: f32[8,32], index: 9, kind: output, shape index: {}]  }
   0x1   :  { %15 = vsyncpa [#allocation6], 0 }
   0x2   :  { %16 = vsyncpa [#allocation9], 0 }
   0x3   :  { %17 = vsyncpa [#allocation12], 0 }
   0x4   :  { %18 = vsyncpa [#allocation15], 0 }
   0x5   :  { %19 = vsyncpa [#allocation4], 0  ;;  %s771_s30 = smov [#allocation5]   ;;  %s772_s11 = smov [#allocation8]  }
   0x6   :  { %s36_s10 = sshll.u32 %s771_s30, 4  ;;  %s56_s12 = sshll.u32 %s772_s11, 4  ;;  %s37_s10 = int_to_ptr.vmem [resolvable:$true] %s36_s10  ;;  %s57_s12 = int_to_ptr.vmem [resolvable:$true] %s56_s12 }
   0x7   :  { %s587_s13 = scalar_lea.vmem %s37_s10, 128  ;;  %p592_p1 = scmp.lt.s32.totalorder %s37_s10, %s37_s10 }
   0x8   :  { %p588_p0 = scmp.ne.s32.totalorder %s37_s10, %s587_s13  ;;  %p593_p2 = scmp.lt.s32.totalorder %s587_s13, %s587_s13 }
   0xa   :  { %p594_p3 = por %p593_p2, %p592_p1 }
   0xc   :  { %p595_p4 = pnand %p594_p3, %p588_p0 }
   0xe   :  { %598 = shalt.err (!%p595_p4)
}
   0xf   :  { %39 = dma.hbm_to_vmem [thread:$0]  %s887_s1, 128, %s37_s10, [#allocation6]  }
  0x10   :  { %s607_s16 = scalar_lea.vmem %s57_s12, 128  ;;  %p612_p6 = scmp.lt.s32.totalorder %s57_s12, %s57_s12 }
  0x11   :  { %p608_p5 = scmp.ne.s32.totalorder %s57_s12, %s607_s16  ;;  %p613_p7 = scmp.lt.s32.totalorder %s607_s16, %s607_s16 }
  0x13   :  { %p614_p8 = por %p613_p7, %p612_p6 }
  0x15   :  { %p615_p9 = pnand %p614_p8, %p608_p5 }
  0x17   :  { %618 = shalt.err (!%p615_p9)
}
  0x18   :  { %59 = dma.hbm_to_vmem [thread:$0]  %s889_s3, 128, %s57_s12, [#allocation9]  }
  0x19   :  { %s773_s19 = smov [#allocation11]   ;;  %s774_s21 = smov [#allocation2]  }
  0x1a   :  { %s77_s20 = sshll.u32 %s773_s19, 4  ;;  %s26_s22 = sshll.u32 %s774_s21, 4  ;;  %s78_s20 = int_to_ptr.vmem [resolvable:$true] %s77_s20  ;;  %s27_s22 = int_to_ptr.vmem [resolvable:$true] %s26_s22 }
  0x1b   :  { %s627_s23 = scalar_lea.vmem %s78_s20, 512  ;;  %p632_p11 = scmp.lt.s32.totalorder %s78_s20, %s78_s20 }
  0x1c   :  { %p628_p10 = scmp.ne.s32.totalorder %s78_s20, %s627_s23  ;;  %p633_p12 = scmp.lt.s32.totalorder %s627_s23, %s627_s23 }
  0x1e   :  { %p634_p13 = por %p633_p12, %p632_p11 }
  0x20   :  { %p635_p0 = pnand %p634_p13, %p628_p10 }
  0x22   :  { %638 = shalt.err (!%p635_p0)
}
  0x23   :  { %s775_s1 = smov 128   ;;  %s776_s24 = smov 8  }
  0x24   :  { %83 = dma.hbm_to_vmem [thread:$0]  %s891_s5, 512, %s78_s20, [#allocation12], %s775_s1, %s775_s1, %s776_s24  }
  0x25   :  { %s647_s26 = scalar_lea.vmem %s27_s22, 128  ;;  %p652_p2 = scmp.lt.s32.totalorder %s27_s22, %s27_s22 }
  0x26   :  { %p648_p1 = scmp.ne.s32.totalorder %s27_s22, %s647_s26  ;;  %p653_p3 = scmp.lt.s32.totalorder %s647_s26, %s647_s26 }
  0x28   :  { %p654_p4 = por %p653_p3, %p652_p2 }
  0x2a   :  { %p655_p5 = pnand %p654_p4, %p648_p1 }
  0x2c   :  { %658 = shalt.err (!%p655_p5)
}
  0x2d   :  { %29 = dma.hbm_to_vmem [thread:$0]  %s886_s0, 128, %s27_s22, [#allocation3]  }
  0x2e   :  { %s777_s29 = smov [#allocation7]   ;;  %s778_s10 = smov [#allocation10]  }
  0x2f   :  { %s46_s30 = sshll.u32 %s777_s29, 4  ;;  %s65_s11 = sshll.u32 %s778_s10, 4  ;;  %s47_s30 = int_to_ptr.vmem [resolvable:$true] %s46_s30  ;;  %s66_s11 = int_to_ptr.vmem [resolvable:$true] %s65_s11 }
  0x30   :  { %s667_s12 = scalar_lea.vmem %s47_s30, 128  ;;  %p672_p7 = scmp.lt.s32.totalorder %s47_s30, %s47_s30 }
  0x31   :  { %p668_p6 = scmp.ne.s32.totalorder %s47_s30, %s667_s12  ;;  %p673_p8 = scmp.lt.s32.totalorder %s667_s12, %s667_s12 }
  0x33   :  { %p674_p9 = por %p673_p8, %p672_p7 }
  0x35   :  { %p675_p10 = pnand %p674_p9, %p668_p6 }
  0x37   :  { %678 = shalt.err (!%p675_p10)
}
  0x38   :  { %49 = dma.hbm_to_vmem [thread:$0]  %s888_s2, 128, %s47_s30, [#allocation6]  }
  0x39   :  { %s687_s14 = scalar_lea.vmem %s66_s11, 512  ;;  %p692_p12 = scmp.lt.s32.totalorder %s66_s11, %s66_s11 }
  0x3a   :  { %p688_p11 = scmp.ne.s32.totalorder %s66_s11, %s687_s14  ;;  %p693_p13 = scmp.lt.s32.totalorder %s687_s14, %s687_s14 }
  0x3c   :  { %p694_p0 = por %p693_p13, %p692_p12 }
  0x3e   :  { %p695_p1 = pnand %p694_p0, %p688_p11 }
  0x40   :  { %698 = shalt.err (!%p695_p1)
}
  0x41   :  { %71 = dma.hbm_to_vmem [thread:$0]  %s890_s4, 512, %s66_s11, [#allocation9], %s775_s1, %s775_s1, %s776_s24  }
  0x42   :  { %s779_s16 = smov [#allocation13]   ;;  %s780_s18 = smov [#allocation14]  }
  0x43   :  { %s89_s17 = sshll.u32 %s779_s16, 4  ;;  %s101_s19 = sshll.u32 %s780_s18, 4  ;;  %s90_s17 = int_to_ptr.vmem [resolvable:$true] %s89_s17  ;;  %s102_s19 = int_to_ptr.vmem [resolvable:$true] %s101_s19 }
  0x44   :  { %s707_s2 = scalar_lea.vmem %s90_s17, 256  ;;  %p712_p3 = scmp.lt.s32.totalorder %s90_s17, %s90_s17 }
  0x45   :  { %p708_p2 = scmp.ne.s32.totalorder %s90_s17, %s707_s2  ;;  %p713_p4 = scmp.lt.s32.totalorder %s707_s2, %s707_s2 }
  0x47   :  { %p714_p5 = por %p713_p4, %p712_p3 }
  0x49   :  { %p715_p6 = pnand %p714_p5, %p708_p2 }
  0x4b   :  { %718 = shalt.err (!%p715_p6)
}
  0x4c   :  { %95 = dma.hbm_to_vmem [thread:$0]  %s892_s6, 256, %s90_s17, [#allocation12], %s775_s1, %s775_s1, %s776_s24  }
  0x4d   :  { %s727_s4 = scalar_lea.vmem %s102_s19, 512  ;;  %p732_p8 = scmp.lt.s32.totalorder %s102_s19, %s102_s19 }
  0x4e   :  { %p728_p7 = scmp.ne.s32.totalorder %s102_s19, %s727_s4  ;;  %p733_p9 = scmp.lt.s32.totalorder %s727_s4, %s727_s4 }
  0x50   :  { %p734_p10 = por %p733_p9, %p732_p8 }
  0x52   :  { %p735_p11 = pnand %p734_p10, %p728_p7 }
  0x54   :  { %738 = shalt.err (!%p735_p11)
}
  0x55   :  { %107 = dma.hbm_to_vmem [thread:$0]  %s893_s7, 512, %s102_s19, [#allocation15], %s775_s1, %s775_s1, %s776_s24  }
  0x56   :  { %759 = dma.done.wait [#allocation3], 128  }
  0x57   :  { %760 = vsyncadd [#allocation3], 4294967168 }
  0x58   :  { %761 = dma.done.wait [#allocation6], 256  }
  0x59   :  { %762 = vsyncadd [#allocation6], 4294967040 }
  0x5a   :  { %763 = dma.done.wait [#allocation9], 640  }
  0x5b   :  { %764 = vsyncadd [#allocation9], 4294966656 }
  0x5c   :  { %765 = dma.done.wait [#allocation12], 768  }
  0x5d   :  { %766 = vsyncadd [#allocation12], 4294966528 }
  0x5e   :  { %767 = dma.done.wait [#allocation15], 512  }
  0x5f   :  { %768 = vsyncadd [#allocation15], 4294966784  ;;  %v781_v0 = vmov 0.0   ;;  %vm782_vm0 = vmmov 0   ;;  %v143_v1 = vld [vmem:[#allocation11 + $0x18] sm:$0xff]  ;;  %v142_v3 = vld [vmem:[#allocation11 + $0x10] sm:$0xff] }
  0x60   :  { %518 = vmatprep.subr.mxu0 %v781_v0  ;;  %529 = vmatprep.subr.mxu1 %v781_v0  ;;  %v138_v2 = vld [vmem:[#allocation10 + $0x18] sm:$0xff]  ;;  %v137_v4 = vld [vmem:[#allocation10 + $0x10] sm:$0xff]  ;;  %v141_v5 = vld [vmem:[#allocation11 + $0x8] sm:$0xff]  ;;  %vm144_vm1 = vcmask 261120   ;;  %vm294_vm2 = vcmask 130048   ;;  %s783_s1 = smov 32  }
  0x61   :  { %526 = vmatprep.mubr.msk.f32.mxu0 %vm782_vm0, %v781_v0  ;;  %537 = vmatprep.mubr.msk.f32.mxu1 %vm782_vm0, %v781_v0  ;;  %v136_v6 = vld [vmem:[#allocation10 + $0x8] sm:$0xff]  ;;  %v140_v7 = vld [vmem:[#allocation11] sm:$0xff]  ;;  %v291_v15 = vld [vmem:[#allocation7] sm:$0xff]  ;;  %s784_s24 = smov 96   ;;  %s785_s25 = smov [#allocation16]  }
  0x62   :  { %519 = vmatpush3.msra.mxu0 %v143_v1  ;;  %530 = vmatpush3.msra.mxu1 %v138_v2  ;;  %v135_v8 = vld [vmem:[#allocation10] sm:$0xff]  ;;  %v139_v9 = vld [vmem:[#allocation5] sm:$0xff]  ;;  %v371_v16 = vld [vmem:[#allocation14 + $0x8] sm:$0xff] }
  0x63   :  { %520 = vmatprep.subr.mxu0 %v781_v0  ;;  %531 = vmatprep.subr.mxu1 %v781_v0  ;;  %v134_v10 = vld [vmem:[#allocation2] sm:$0xff]  ;;  %v293_v11 = vld [vmem:[#allocation13 + $0x8] sm:$0xff]  ;;  %v370_v17 = vld [vmem:[#allocation14] sm:$0xff] }
  0x64   :  { %521 = vmatpush3.msra.mxu0 %v142_v3  ;;  %532 = vmatpush3.msra.mxu1 %v137_v4  ;;  %v373_v12 = vld [vmem:[#allocation14 + $0x18] sm:$0xff]  ;;  %v292_v13 = vld [vmem:[#allocation13] sm:$0xff]  ;;  %v369_v18 = vld [vmem:[#allocation8] sm:$0xff] }
  0x65   :  { %522 = vmatprep.subr.mxu0 %v781_v0  ;;  %533 = vmatprep.subr.mxu1 %v781_v0  ;;  %v372_v14 = vld [vmem:[#allocation14 + $0x10] sm:$0xff] }
  0x66   :  { %523 = vmatpush3.msra.mxu0 %v141_v5  ;;  %534 = vmatpush3.msra.mxu1 %v136_v6  ;;  %v498_v28 = vld [vmem:[%s894_s8] ss:$0 sm:$0xff]  ;;  %s481_s8 = sshll.u32 %s785_s25, 4  ;;  %s482_s8 = int_to_ptr.vmem [resolvable:$true] %s481_s8 }
  0x67   :  { %524 = vmatprep.subr.mxu0 %v781_v0  ;;  %535 = vmatprep.subr.mxu1 %v781_v0  ;;  %s739_s3 = scalar_lea.vmem %s482_s8, 128  ;;  %p744_p13 = scmp.lt.s32.totalorder %s482_s8, %s482_s8 }
  0x68   :  { %525 = vmatpush3.msra.mxu0 %v140_v7  ;;  %536 = vmatpush3.msra.mxu1 %v135_v8  ;;  %p740_p12 = scmp.ne.s32.totalorder %s482_s8, %s739_s3  ;;  %p745_p0 = scmp.lt.s32.totalorder %s739_s3, %s739_s3 }
  0x69   :  { %527 = vmatmul.mubr.msk.f32.vlgmr.msra.gmra.mxu0 %vm144_vm1, %v139_v9  ;;  %538 = vmatmul.mubr.msk.f32.vlgmr.msra.gmra.mxu1 %vm144_vm1, %v134_v10 }
  0x6a   :  { %540 = vmatprep.subr.mxu0 %v781_v0  ;;  %547 = vmatprep.subr.mxu1 %v781_v0  ;;  %p746_p1 = por %p745_p0, %p744_p13 }
  0x6b   :  { %541 = vmatpush3.msra.mxu0 %v293_v11  ;;  %548 = vmatpush3.msra.mxu1 %v373_v12 }
  0x6c   :  { %542 = vmatprep.subr.mxu0 %v781_v0  ;;  %549 = vmatprep.subr.mxu1 %v781_v0  ;;  %p747_p2 = pnand %p746_p1, %p740_p12 }
  0x6d   :  { %543 = vmatpush3.msra.mxu0 %v292_v13  ;;  %544 = vmatprep.mubr.msk.f32.mxu0 %vm782_vm0, %v781_v0 }
  0x6e   :  { %550 = vmatpush3.msra.mxu1 %v372_v14  ;;  %545 = vmatmul.mubr.msk.f32.vlgmr.msra.gmra.mxu0 %vm294_vm2, %v291_v15 }
  0x6f   :  { %551 = vmatprep.subr.mxu1 %v781_v0  ;;  %555 = vmatprep.mubr.msk.f32.mxu1 %vm782_vm0, %v781_v0 }
  0x70   :  { %552 = vmatpush3.msra.mxu1 %v371_v16 }
  0x71   :  { %553 = vmatprep.subr.mxu1 %v781_v0 }
  0x72   :  { %554 = vmatpush3.msra.mxu1 %v370_v17 }
  0x73   :  { %556 = vmatmul.mubr.msk.f32.vlgmr.msra.gmra.mxu1 %vm144_vm1, %v369_v18 }
 0x129   :  { %v214_v19 = vpop.f32.mrf.mxu0  ;;  %v287_v20 = vpop.f32.mrf.mxu1 }
 0x12a   :  { %v288_v23 = vadd.f32 %v287_v20, %v214_v19 }
 0x12b   :  { %v528_v21 = vpop.f32.mrf.mxu0  ;;  %v539_v22 = vpop.f32.mrf.mxu1 }
 0x12e   :  { %v364_v24 = vpop.f32.mrf.mxu0 }
 0x12f   :  { %v368_v26 = vadd.f32 %v364_v24, %v288_v23 }
 0x130   :  { %v546_v25 = vpop.f32.mrf.mxu0 }
 0x133   :  { %v443_v27 = vpop.f32.mrf.mxu1 }
 0x134   :  { %v447_v29 = vadd.f32 %v443_v27, %v368_v26 }
 0x135   :  { %v557_v30 = vpop.f32.mrf.mxu1 }
 0x136   :  { %v455_v31 = vadd.f32 %v498_v28, %v447_v29 }
 0x138   :  { %573 = vtanh.f32 %v455_v31  ;;  %v499_v34 = vmul.f32 -1.442695, %v455_v31 }
 0x13a   :  { %575 = vpow2.f32 %v499_v34 }
 0x145   :  { %v574_v32 = vpop.eup %573 }
 0x146   :  { %v463_v33 = vsub.f32 %v574_v32, %v369_v18 }
 0x147   :  { %v576_v35 = vpop.eup %575 }
 0x148   :  { %465 = vrot.lane.b32.xlu0 %v463_v33, %s783_s1  ;;  %v460_v36 = vadd.f32 1.0, %v576_v35 }
 0x14a   :  { %577 = vrcp.f32 %v460_v36 }
 0x157   :  { %v578_v37 = vpop.eup %577 }
 0x1ba   :  { %v466_v38 = vpop.permute.xlu0 %465 }
 0x1bb   :  { %v468_v39 = vmul.f32 %v578_v37, %v466_v38 }
 0x1bd   :  { %470 = vrot.lane.b32.xlu0 %v468_v39, %s784_s24 }
 0x22f   :  { %v471_v40 = vpop.permute.xlu0 %470 }
 0x230   :  { %v473_v41 = vadd.f32 %v471_v40, %v369_v18 }
 0x232   :  { %474 = vst.msk [vmem:[#allocation16] sm:$0xff] %vm144_vm1, %v473_v41 }
 0x233   :  { %750 = shalt.err (!%p747_p2)
}
 0x234   :  { %484 = dma.vmem_to_hbm [thread:$0]  %s482_s8, 128, %s895_s9, [#allocation4]  }
 0x235   :  { %769 = dma.done.wait [#allocation4], 128  }
 0x236   :  { %770 = vsyncadd [#allocation4], 4294967168 }
 0x237   :  { %488 = vsyncpa [#allocation3], 1 }
 0x238   :  { %489 = vsyncpa [#allocation6], 1 }
 0x239   :  { %490 = vsyncpa [#allocation9], 1 }
 0x23a   :  { %491 = vsyncpa [#allocation12], 1 }
 0x23b   :  { %492 = vsyncpa [#allocation15], 1 }
 0x23c   :  { %493 = vsyncpa [#allocation4], 1 }

</bundles_post_ra>
